<compile_context>
chip_gen: v7x
topology: tpu7x:2x2x1
jax: 0.10.0
libtpu: 0.0.40
codegen_flags: <defaults>
</compile_context>

<pallas_src>
import functools

import jax
import jax.numpy as jnp
from jax import lax
from jax.experimental import pallas as pl
from jax.experimental.pallas import tpu as pltpu


def _round_up(x, m):
    return ((x + m - 1) // m) * m


def _pick_batch_tile(B):
    """Sublane-aligned batch tile; >= 2 tiles when possible (v7x megacore)."""
    b8 = _round_up(B, 8)
    for tb in (256, 128, 64, 32, 16, 8):   # big tiles amortize per-step overhead
        if b8 >= 2 * tb:
            return tb, _round_up(B, tb)
    return 8, b8                            # tiny batch: single 8-row tile


def _snn_kernel(x_ref, w1_ref, b1_ref, w2_ref, b2_ref, out_ref,
                *, level, time_step, threshold):
    f32 = jnp.float32
    active_steps = min(time_step, level)     # steps with nonzero drive (t < level)
    idle_steps = time_step - active_steps    # zero-input drain steps (t >= level)

    # --- LLLinear #1 (hoisted out of the time loop).  Per-step IF drive while
    # t < level is (x/level) @ W1 + b1/level; for t >= level it is exactly 0.
    # The 1/level, 1/threshold scales act on the (tb, H1) matmul OUTPUT.
    h = jnp.dot(x_ref[...], w1_ref[...], preferred_element_type=jnp.float32)
    dv = (h + b1_ref[...]) * f32(1.0 / (level * threshold))   # membrane step

    # --- ORIIFNeuron, t < level: v0 = 0.5 (threshold-normalized), spike at
    # v >= 1, soft reset.  Only v is loop-carried.
    v0 = jnp.full(dv.shape, 0.5, dtype=jnp.float32)

    def step_active(_, v):
        v = v + dv
        return v - (v >= 1.0).astype(jnp.float32)

    v = lax.fori_loop(0, active_steps, step_active, v0,
                      unroll=min(max(active_steps, 1), 8))

    # Spikes emitted in the active phase via membrane conservation:
    # (v0 + active*dv) - v_final equals the integer spike count up to ~1e-5 of
    # f32 accumulation noise; floor(x+0.5) restores it exactly.
    active_spikes = jnp.floor(v0 + f32(active_steps) * dv - v + 0.5)

    # --- ORIIFNeuron, t >= level (zero drive): pure drain.  One spike per idle
    # step while v >= 1, so the count is exactly min(idle, floor(max(v, 0)))
    # -- bit-identical to iterating the remaining T - level steps.
    if idle_steps > 0:
        drain_spikes = jnp.minimum(f32(idle_steps),
                                   jnp.floor(jnp.maximum(v, 0.0)))
        spk_sum = active_spikes + drain_spikes
    else:
        spk_sum = active_spikes

    # --- LLLinear #2 (hoisted): the output Linear is linear in the spike
    # train, so push the summed spike COUNTS through W2 once (counts <= 256
    # are exact in bf16) and apply the threshold scale in f32 afterwards.
    # ST-BIF spreads b2/level over the first `level` steps ->
    # bias contribution b2 * min(T, level) / level.
    y = jnp.dot(spk_sum.astype(w2_ref.dtype), w2_ref[...],
                preferred_element_type=jnp.float32)
    out_ref[...] = (y * f32(threshold)
                    + b2_ref[...] * f32(active_steps / level)).astype(out_ref.dtype)

    # TODO(synk): Judger/is_work early termination, _record_inout hooks and the
    # ViT pos_embed/cls_token zeroing are dead code (network_finish forced
    # False) or host-side bookkeeping; the kernel always simulates T steps.
    # TODO(synk): bipolar (negative) spikes / over-fire correction of the
    # IFNeuron variant are not modeled; ORIIFNeuron here is positive-spike,
    # soft-reset, with v0 = 0.5 in threshold-normalized units.


def snn_wrapper_forward(x_nchw, w1, b1, w2, b2, *, level, time_step, threshold,
                        matmul_dtype=jnp.bfloat16):
    """Full T-timestep SNN forward (rate encoding, ORIIFNeuron, two LLLinears).

    matmul_dtype: dtype fed to the MXU (x, W1, W2).  bf16 is the MXU's
    full-rate format on v5e/v6e/v7x and halves the dominant x/weight memory
    traffic; pass jnp.float32 for bit-parity with the f32 PyTorch reference.
    All IF-neuron elementwise math is f32 regardless.
    """
    B = x_nchw.shape[0]
    D_in, H1 = w1.shape
    assert w2.shape[0] == H1
    D_out = w2.shape[1]

    # torch.flatten(x, 1): NCHW -> [B, C*H*W], row-major (same as reshape).
    x_flat = x_nchw.reshape(B, D_in).astype(matmul_dtype)

    # Batch tiles: sublane-aligned, >= 2 tiles when possible so both v7x
    # TensorCores get work; padding rows are sliced off below.
    tb, b_pad = _pick_batch_tile(B)
    if b_pad != B:
        x_flat = jnp.pad(x_flat, ((0, b_pad - B), (0, 0)))

    # Lane-dense output: pad D_out to a multiple of 128 so stores lower to
    # unmasked vst instead of vst.msk; sliced off below.
    d_out_p = _round_up(D_out, 128)
    if d_out_p != D_out:
        w2 = jnp.pad(w2, ((0, 0), (0, d_out_p - D_out)))
        b2 = jnp.pad(b2, ((0, d_out_p - D_out),))

    w1_m = w1.astype(matmul_dtype)
    w2_m = w2.astype(matmul_dtype)
    b1_2d = b1.reshape(1, H1).astype(jnp.float32)
    b2_2d = b2.reshape(1, d_out_p).astype(jnp.float32)

    kernel = functools.partial(_snn_kernel, level=level, time_step=time_step,
                               threshold=threshold)

    # Advisory cost model: 2 matmuls + O(level) elementwise IF updates.
    mm_isz = jnp.dtype(matmul_dtype).itemsize
    active_steps = min(time_step, level)
    cost = pl.CostEstimate(
        flops=(2 * b_pad * D_in * H1 + 2 * b_pad * H1 * d_out_p
               + 4 * active_steps * b_pad * H1),
        transcendentals=0,
        bytes_accessed=(b_pad * D_in * mm_isz
                        + (D_in * H1 + H1 * d_out_p) * mm_isz
                        + (H1 + d_out_p) * 4
                        + b_pad * d_out_p * 4))

    # VMEM budget: double-buffered x/out tiles + resident (double-buffered)
    # weights + f32 IF intermediates.  Explicit limit so resident weights do
    # not trip the smaller scoped-VMEM defaults, capped at v7x's 64 MiB.
    vmem_need = (2 * tb * (D_in * mm_isz + d_out_p * 4)
                 + 2 * (D_in * H1 + H1 * d_out_p) * mm_isz
                 + 2 * (H1 + d_out_p) * 4
                 + 8 * tb * H1 * 4)
    vmem_limit = int(min(max(2 * vmem_need, 32 << 20), 64 << 20))

    # NOTE(v7x): for production-sized W1 (>~ 20 MiB) add a D_in grid axis
    # marked "arbitrary" with an f32 VMEM accumulator instead of keeping W1
    # fully resident (64 MiB physical VMEM), and/or single-buffer the weights.

    out_pad = pl.pallas_call(
        kernel,
        out_shape=jax.ShapeDtypeStruct((b_pad, d_out_p), jnp.float32),
        grid_spec=pltpu.PrefetchScalarGridSpec(
            num_scalar_prefetch=0,
            grid=(b_pad // tb,),
            in_specs=[
                pl.BlockSpec((tb, D_in), lambda b: (b, 0)),     # x tile (streamed)
                pl.BlockSpec((D_in, H1), lambda b: (0, 0)),     # W1 (resident)
                pl.BlockSpec((1, H1), lambda b: (0, 0)),        # b1
                pl.BlockSpec((H1, d_out_p), lambda b: (0, 0)),  # W2 (resident)
                pl.BlockSpec((1, d_out_p), lambda b: (0, 0)),   # b2
            ],
            out_specs=pl.BlockSpec((tb, d_out_p), lambda b: (b, 0)),
        ),
        compiler_params=pltpu.CompilerParams(
            dimension_semantics=("parallel",),   # batch tiles are independent
            vmem_limit_bytes=vmem_limit,
        ),
        cost_estimate=cost,
    )(x_flat, w1_m, b1_2d, w2_m, b2_2d)

    return out_pad[:B, :D_out]


if __name__ == "__main__":
    # Small, deterministic example shapes.
    B, C, H, W = 2, 4, 16, 16        # NCHW PyTorch input
    D_in = C * H * W                 # 1024
    H1 = 128                         # hidden width (lane-aligned)
    D_out = 128                      # output width ("classes")
    LEVEL = 4                        # quantization level / rate-code grain
    T = 8                            # time_step (small for the demo)
    THRESHOLD = 0.25                 # MyQuan scale -> ORIIFNeuron q_threshold

    key = jax.random.PRNGKey(0)
    kx, k1, k2, k3, k4 = jax.random.split(key, 5)
    x = jax.random.normal(kx, (B, C, H, W), dtype=jnp.float32)
    w1 = 0.02 * jax.random.normal(k1, (D_in, H1), dtype=jnp.float32)
    b1 = 0.01 * jax.random.normal(k2, (H1,), dtype=jnp.float32)
    w2 = 0.02 * jax.random.normal(k3, (H1, D_out), dtype=jnp.float32)
    b2 = 0.01 * jax.random.normal(k4, (D_out,), dtype=jnp.float32)

    out = snn_wrapper_forward(
        x, w1, b1, w2, b2, level=LEVEL, time_step=T, threshold=THRESHOLD)
    out = jax.block_until_ready(out)

    assert out.shape == (B, D_out)
    assert bool(jnp.isfinite(out).all())
    print("KERNEL_OK")
</pallas_src>

<mosaic_0001>
module attributes {stable_mosaic.version = 11 : i64} {
  func.func @_snn_kernel(%arg0: i32, %arg1: memref<8x1024xbf16, #tpu.memory_space<vmem>>, %arg2: memref<1024x128xbf16, #tpu.memory_space<vmem>>, %arg3: memref<1x128xf32, #tpu.memory_space<vmem>>, %arg4: memref<128x128xbf16, #tpu.memory_space<vmem>>, %arg5: memref<1x128xf32, #tpu.memory_space<vmem>>, %arg6: memref<8x128xf32, #tpu.memory_space<vmem>>) attributes {dimension_semantics = [#tpu.dimension_semantics<parallel>], iteration_bounds = array<i64: 1>, scalar_prefetch = 0 : i64, scratch_operands = 0 : i64, tpu.core_type = #tpu.core_type<tc>, window_params = [{transform_indices = @transform_0, window_bounds = array<i64: 8, 1024>}, {pipeline_mode = #tpu.pipeline_mode<synchronous>, transform_indices = @transform_1, window_bounds = array<i64: 1024, 128>}, {pipeline_mode = #tpu.pipeline_mode<synchronous>, transform_indices = @transform_2, window_bounds = array<i64: 1, 128>}, {pipeline_mode = #tpu.pipeline_mode<synchronous>, transform_indices = @transform_3, window_bounds = array<i64: 128, 128>}, {pipeline_mode = #tpu.pipeline_mode<synchronous>, transform_indices = @transform_4, window_bounds = array<i64: 1, 128>}, {transform_indices = @transform_5, window_bounds = array<i64: 8, 128>}]} {
    %c0 = arith.constant 0 : index
    %c0_0 = arith.constant 0 : index
    %0 = vector.load %arg1[%c0, %c0_0] : memref<8x1024xbf16, #tpu.memory_space<vmem>>, vector<8x1024xbf16>
    %c0_1 = arith.constant 0 : index
    %c0_2 = arith.constant 0 : index
    %1 = vector.load %arg2[%c0_1, %c0_2] : memref<1024x128xbf16, #tpu.memory_space<vmem>>, vector<1024x128xbf16>
    %cst = arith.constant dense<0.000000e+00> : vector<8x128xf32>
    %2 = tpu.matmul %0, %1, %cst {dimension_numbers = #tpu.dot_dimension_numbers<[1], [0], [0], [1], [0, 0, 1, 1], [], []>} : vector<8x1024xbf16>, vector<1024x128xbf16>, vector<8x128xf32> -> vector<8x128xf32>
    %c0_3 = arith.constant 0 : index
    %c0_4 = arith.constant 0 : index
    %3 = vector.load %arg3[%c0_3, %c0_4] : memref<1x128xf32, #tpu.memory_space<vmem>>, vector<1x128xf32>
    %4 = vector.broadcast %3 : vector<1x128xf32> to vector<8x128xf32>
    %5 = arith.addf %2, %4 : vector<8x128xf32>
    %cst_5 = arith.constant 1.000000e+00 : f32
    %6 = vector.broadcast %cst_5 : f32 to vector<8x128xf32>
    %7 = arith.mulf %5, %6 : vector<8x128xf32>
    %cst_6 = arith.constant 5.000000e-01 : f32
    %8 = vector.broadcast %cst_6 : f32 to vector<8x128xf32>
    %c0_i32 = arith.constant 0 : i32
    %9 = arith.addf %8, %7 : vector<8x128xf32>
    %cst_7 = arith.constant 1.000000e+00 : f32
    %10 = vector.broadcast %cst_7 : f32 to vector<8x128xf32>
    %11 = arith.cmpf oge, %9, %10 : vector<8x128xf32>
    %12 = arith.extui %11 : vector<8x128xi1> to vector<8x128xi32>
    %13 = arith.sitofp %12 : vector<8x128xi32> to vector<8x128xf32>
    %14 = arith.subf %9, %13 : vector<8x128xf32>
    %c1_i32 = arith.constant 1 : i32
    %15 = arith.addf %14, %7 : vector<8x128xf32>
    %cst_8 = arith.constant 1.000000e+00 : f32
    %16 = vector.broadcast %cst_8 : f32 to vector<8x128xf32>
    %17 = arith.cmpf oge, %15, %16 : vector<8x128xf32>
    %18 = arith.extui %17 : vector<8x128xi1> to vector<8x128xi32>
    %19 = arith.sitofp %18 : vector<8x128xi32> to vector<8x128xf32>
    %20 = arith.subf %15, %19 : vector<8x128xf32>
    %c2_i32 = arith.constant 2 : i32
    %21 = arith.addf %20, %7 : vector<8x128xf32>
    %cst_9 = arith.constant 1.000000e+00 : f32
    %22 = vector.broadcast %cst_9 : f32 to vector<8x128xf32>
    %23 = arith.cmpf oge, %21, %22 : vector<8x128xf32>
    %24 = arith.extui %23 : vector<8x128xi1> to vector<8x128xi32>
    %25 = arith.sitofp %24 : vector<8x128xi32> to vector<8x128xf32>
    %26 = arith.subf %21, %25 : vector<8x128xf32>
    %c3_i32 = arith.constant 3 : i32
    %27 = arith.addf %26, %7 : vector<8x128xf32>
    %cst_10 = arith.constant 1.000000e+00 : f32
    %28 = vector.broadcast %cst_10 : f32 to vector<8x128xf32>
    %29 = arith.cmpf oge, %27, %28 : vector<8x128xf32>
    %30 = arith.extui %29 : vector<8x128xi1> to vector<8x128xi32>
    %31 = arith.sitofp %30 : vector<8x128xi32> to vector<8x128xf32>
    %32 = arith.subf %27, %31 : vector<8x128xf32>
    %cst_11 = arith.constant 4.000000e+00 : f32
    %33 = vector.broadcast %cst_11 : f32 to vector<8x128xf32>
    %34 = arith.mulf %33, %7 : vector<8x128xf32>
    %35 = arith.addf %8, %34 : vector<8x128xf32>
    %36 = arith.subf %35, %32 : vector<8x128xf32>
    %cst_12 = arith.constant 5.000000e-01 : f32
    %37 = vector.broadcast %cst_12 : f32 to vector<8x128xf32>
    %38 = arith.addf %36, %37 : vector<8x128xf32>
    %39 = math.floor %38 : vector<8x128xf32>
    %cst_13 = arith.constant 0.000000e+00 : f32
    %40 = vector.broadcast %cst_13 : f32 to vector<8x128xf32>
    %41 = arith.maximumf %32, %40 : vector<8x128xf32>
    %42 = math.floor %41 : vector<8x128xf32>
    %cst_14 = arith.constant 4.000000e+00 : f32
    %43 = vector.broadcast %cst_14 : f32 to vector<8x128xf32>
    %44 = arith.minimumf %43, %42 : vector<8x128xf32>
    %45 = arith.addf %39, %44 : vector<8x128xf32>
    %46 = arith.truncf %45 : vector<8x128xf32> to vector<8x128xbf16>
    %c0_15 = arith.constant 0 : index
    %c0_16 = arith.constant 0 : index
    %47 = vector.load %arg4[%c0_15, %c0_16] : memref<128x128xbf16, #tpu.memory_space<vmem>>, vector<128x128xbf16>
    %cst_17 = arith.constant dense<0.000000e+00> : vector<8x128xf32>
    %48 = tpu.matmul %46, %47, %cst_17 {dimension_numbers = #tpu.dot_dimension_numbers<[1], [0], [0], [1], [0, 0, 1, 1], [], []>} : vector<8x128xbf16>, vector<128x128xbf16>, vector<8x128xf32> -> vector<8x128xf32>
    %cst_18 = arith.constant 2.500000e-01 : f32
    %49 = vector.broadcast %cst_18 : f32 to vector<8x128xf32>
    %50 = arith.mulf %48, %49 : vector<8x128xf32>
    %c0_19 = arith.constant 0 : index
    %c0_20 = arith.constant 0 : index
    %51 = vector.load %arg5[%c0_19, %c0_20] : memref<1x128xf32, #tpu.memory_space<vmem>>, vector<1x128xf32>
    %cst_21 = arith.constant 1.000000e+00 : f32
    %52 = vector.broadcast %cst_21 : f32 to vector<1x128xf32>
    %53 = arith.mulf %51, %52 : vector<1x128xf32>
    %54 = vector.broadcast %53 : vector<1x128xf32> to vector<8x128xf32>
    %55 = arith.addf %50, %54 : vector<8x128xf32>
    %c0_22 = arith.constant 0 : index
    %c0_23 = arith.constant 0 : index
    %56 = vector.load %arg6[%c0_22, %c0_23] : memref<8x128xf32, #tpu.memory_space<vmem>>, vector<8x128xf32>
    tpu.vector_store %arg6[%c0_22, %c0_23], %55 {strides = array<i32>} : memref<8x128xf32, #tpu.memory_space<vmem>>, vector<8x128xf32>,
    return
  }
  func.func @transform_0(%arg0: i32) -> (i32, i32) {
    %c0_i32 = arith.constant 0 : i32
    %c0_i32_0 = arith.constant 0 : i32
    return %arg0, %c0_i32 : i32, i32
  }
  func.func @transform_1(%arg0: i32) -> (i32, i32) {
    %c0_i32 = arith.constant 0 : i32
    %c0_i32_0 = arith.constant 0 : i32
    %c0_i32_1 = arith.constant 0 : i32
    return %c0_i32, %c0_i32_0 : i32, i32
  }
  func.func @transform_2(%arg0: i32) -> (i32, i32) {
    %c0_i32 = arith.constant 0 : i32
    %c0_i32_0 = arith.constant 0 : i32
    %c0_i32_1 = arith.constant 0 : i32
    return %c0_i32, %c0_i32_0 : i32, i32
  }
  func.func @transform_3(%arg0: i32) -> (i32, i32) {
    %c0_i32 = arith.constant 0 : i32
    %c0_i32_0 = arith.constant 0 : i32
    %c0_i32_1 = arith.constant 0 : i32
    return %c0_i32, %c0_i32_0 : i32, i32
  }
  func.func @transform_4(%arg0: i32) -> (i32, i32) {
    %c0_i32 = arith.constant 0 : i32
    %c0_i32_0 = arith.constant 0 : i32
    %c0_i32_1 = arith.constant 0 : i32
    return %c0_i32, %c0_i32_0 : i32, i32
  }
  func.func @transform_5(%arg0: i32) -> (i32, i32) {
    %c0_i32 = arith.constant 0 : i32
    %c0_i32_0 = arith.constant 0 : i32
    return %arg0, %c0_i32 : i32, i32
  }
}

</mosaic_0001>

<bundles_post_ra>
// kernel: tpu_custom_call.1
= control target key start
LH: loop header
LB: loop body
LE: loop exit
PB: predicated region body
PF: predicated region fallthrough
CT: control target
= control target key end

     0   :  { %10 = vsyncpa [#allocation3], 0  ;;  %s1428_s0 = inlined_call_operand.hbm [shape: bf16[8,1024], index: 0, kind: input, shape index: {}]   ;;  %s1429_s1 = inlined_call_operand.hbm [shape: bf16[1024,128], index: 1, kind: input, shape index: {}]   ;;  %s1430_s2 = inlined_call_operand.vmem [shape: f32[1,128], index: 2, kind: input, shape index: {}]   ;;  %s1431_s3 = inlined_call_operand.hbm [shape: bf16[128,128], index: 3, kind: input, shape index: {}]   ;;  %s1432_s4 = inlined_call_operand.vmem [shape: f32[1,128], index: 4, kind: input, shape index: {}]   ;;  %s1433_s5 = inlined_call_operand.hbm [shape: f32[8,128], index: 5, kind: output, shape index: {}]  }
   0x1   :  { %11 = vsyncpa [#allocation6], 0 }
   0x2   :  { %12 = vsyncpa [#allocation4], 0  ;;  %s1317_s18 = smov [#allocation5]   ;;  %s1223_s22 = scalar_lea.hbm %s1429_s1, 8192 }
   0x3   :  { %s28_s19 = sshll.u32 %s1317_s18, 4  ;;  %p1224_p0 = scmp.ne.s32.totalorder %s1429_s1, %s1223_s22  ;;  %s29_s19 = int_to_ptr.vmem [resolvable:$true] %s28_s19 }
   0x4   :  { %p1227_p1 = scmp.lt.u32.totalorder %s1223_s22, %s1429_s1 }
   0x6   :  { %p1229_p2 = pnand %p1227_p1, %p1224_p0 }
   0x8   :  { %1232 = shalt.err (!%p1229_p2)
}
   0x9   :  { %s1233_s27 = scalar_lea.vmem %s29_s19, 8192  ;;  %p1238_p4 = scmp.lt.s32.totalorder %s29_s19, %s29_s19 }
   0xa   :  { %p1234_p3 = scmp.ne.s32.totalorder %s29_s19, %s1233_s27  ;;  %p1239_p5 = scmp.lt.s32.totalorder %s1233_s27, %s1233_s27 }
   0xc   :  { %p1240_p6 = por %p1239_p5, %p1238_p4 }
   0xe   :  { %p1241_p7 = pnand %p1240_p6, %p1234_p3 }
  0x10   :  { %1244 = shalt.err (!%p1241_p7)
}
  0x11   :  { %s1318_s28 = smov 64   ;;  %s1319_s29 = smov 4  }
  0x12   :  { %34 = dma.hbm_to_vmem [thread:$0]  %s1429_s1, 8192, %s29_s19, [#allocation6], %s1318_s28, %s1318_s28, %s1319_s29  }
  0x13   :  { %s1320_s7 = smov [#allocation2]   ;;  %s1321_s9 = smov [#allocation7]  }
  0x14   :  { %s19_s8 = sshll.u32 %s1320_s7, 4  ;;  %s42_s10 = sshll.u32 %s1321_s9, 4  ;;  %s20_s8 = int_to_ptr.vmem [resolvable:$true] %s19_s8  ;;  %s43_s10 = int_to_ptr.vmem [resolvable:$true] %s42_s10 }
  0x15   :  { %s1245_s13 = scalar_lea.hbm %s1428_s0, 512 }
  0x16   :  { %p1246_p8 = scmp.ne.s32.totalorder %s1428_s0, %s1245_s13  ;;  %p1249_p9 = scmp.lt.u32.totalorder %s1245_s13, %s1428_s0 }
  0x18   :  { %p1251_p10 = pnand %p1249_p9, %p1246_p8 }
  0x1a   :  { %1254 = shalt.err (!%p1251_p10)
}
  0x1b   :  { %s1255_s1 = scalar_lea.vmem %s20_s8, 512  ;;  %p1260_p12 = scmp.lt.s32.totalorder %s20_s8, %s20_s8 }
  0x1c   :  { %p1256_p11 = scmp.ne.s32.totalorder %s20_s8, %s1255_s1  ;;  %p1261_p13 = scmp.lt.s32.totalorder %s1255_s1, %s1255_s1 }
  0x1e   :  { %p1262_p0 = por %p1261_p13, %p1260_p12 }
  0x20   :  { %p1263_p1 = pnand %p1262_p0, %p1256_p11 }
  0x22   :  { %1266 = shalt.err (!%p1263_p1)
}
  0x23   :  { %22 = dma.hbm_to_vmem [thread:$0]  %s1428_s0, 512, %s20_s8, [#allocation3]  }
  0x24   :  { %s1267_s22 = scalar_lea.hbm %s1431_s3, 1024 }
  0x25   :  { %p1268_p2 = scmp.ne.s32.totalorder %s1431_s3, %s1267_s22  ;;  %p1271_p3 = scmp.lt.u32.totalorder %s1267_s22, %s1431_s3 }
  0x27   :  { %p1273_p4 = pnand %p1271_p3, %p1268_p2 }
  0x29   :  { %1276 = shalt.err (!%p1273_p4)
}
  0x2a   :  { %s1277_s27 = scalar_lea.vmem %s43_s10, 1024  ;;  %p1282_p6 = scmp.lt.s32.totalorder %s43_s10, %s43_s10 }
  0x2b   :  { %p1278_p5 = scmp.ne.s32.totalorder %s43_s10, %s1277_s27  ;;  %p1283_p7 = scmp.lt.s32.totalorder %s1277_s27, %s1277_s27 }
  0x2d   :  { %p1284_p8 = por %p1283_p7, %p1282_p6 }
  0x2f   :  { %p1285_p9 = pnand %p1284_p8, %p1278_p5 }
  0x31   :  { %1288 = shalt.err (!%p1285_p9)
}
  0x32   :  { %48 = dma.hbm_to_vmem [thread:$0]  %s1431_s3, 1024, %s43_s10, [#allocation6], %s1318_s28, %s1318_s28, %s1319_s29  }
  0x33   :  { %1311 = dma.done.wait [#allocation3], 512  }
  0x34   :  { %1312 = vsyncadd [#allocation3], 4294966784 }
  0x35   :  { %1313 = dma.done.wait [#allocation6], 9216  }
  0x36   :  { %1314 = vsyncadd [#allocation6], 4294958080  ;;  %v1143_v0 = vld [vmem:[#allocation5 + $0x40] sm:$0xff]   ;;  %v1147_v4 = vld [vmem:[#allocation5 + $0x48] sm:$0xff]   ;;  %vm1323_vm0 = vmmov 0   ;;  %s1324_s6 = smov [#allocation8]  }
  0x37   :  { %v1144_v1 = vld [vmem:[#allocation5 + $0xc0] sm:$0xff]   ;;  %1018 = vmatprep.subr.bf16.mxu0 %v1143_v0  ;;  %v1148_v5 = vld [vmem:[#allocation5 + $0xc8] sm:$0xff]   ;;  %v1151_v8 = vld [vmem:[#allocation5 + $0x50] sm:$0xff]   ;;  %s922_s7 = sshll.u32 %s1324_s6, 4  ;;  %s923_s7 = int_to_ptr.vmem [resolvable:$true] %s922_s7 }
  0x38   :  { %v1145_v2 = vld [vmem:[#allocation5] sm:$0xff]   ;;  %1040 = vmatprep.subr.bf16.mxu1 %v1144_v1  ;;  %v1149_v6 = vld [vmem:[#allocation5 + $0x8] sm:$0xff]   ;;  %v1152_v9 = vld [vmem:[#allocation5 + $0xd0] sm:$0xff]   ;;  %s1289_s8 = scalar_lea.vmem %s923_s7, 128  ;;  %p1294_p11 = scmp.lt.s32.totalorder %s923_s7, %s923_s7 }
  0x39   :  { %v1146_v3 = vld [vmem:[#allocation5 + $0x80] sm:$0xff]   ;;  %1019 = vmatpush3.bf16.msra.mxu0 %v1145_v2  ;;  %v1150_v7 = vld [vmem:[#allocation5 + $0x88] sm:$0xff]   ;;  %v1153_v10 = vld [vmem:[#allocation5 + $0x10] sm:$0xff]   ;;  %p1290_p10 = scmp.ne.s32.totalorder %s923_s7, %s1289_s8  ;;  %p1295_p12 = scmp.lt.s32.totalorder %s1289_s8, %s1289_s8 }
  0x3a   :  { %1041 = vmatpush3.bf16.msra.mxu1 %v1146_v3  ;;  %1020 = vmatprep.subr.bf16.mxu0 %v1147_v4  ;;  %v1154_v11 = vld [vmem:[#allocation5 + $0x90] sm:$0xff]   ;;  %v1155_v12 = vld [vmem:[#allocation5 + $0x58] sm:$0xff]   ;;  %v1159_v16 = vld [vmem:[#allocation5 + $0x60] sm:$0xff]  }
  0x3b   :  { %1042 = vmatprep.subr.bf16.mxu1 %v1148_v5  ;;  %v1156_v13 = vld [vmem:[#allocation5 + $0xd8] sm:$0xff]   ;;  %v1160_v17 = vld [vmem:[#allocation5 + $0xe0] sm:$0xff]   ;;  %v1163_v20 = vld [vmem:[#allocation5 + $0x68] sm:$0xff]   ;;  %p1296_p13 = por %p1295_p12, %p1294_p11 }
  0x3c   :  { %v1157_v14 = vld [vmem:[#allocation5 + $0x18] sm:$0xff]   ;;  %v1161_v18 = vld [vmem:[#allocation5 + $0x20] sm:$0xff]   ;;  %v1164_v21 = vld [vmem:[#allocation5 + $0xe8] sm:$0xff]  }
  0x3d   :  { %1021 = vmatpush3.bf16.msra.mxu0 %v1149_v6  ;;  %v1158_v15 = vld [vmem:[#allocation5 + $0x98] sm:$0xff]   ;;  %v1162_v19 = vld [vmem:[#allocation5 + $0xa0] sm:$0xff]   ;;  %v1165_v22 = vld [vmem:[#allocation5 + $0x28] sm:$0xff]   ;;  %p1297_p0 = pnand %p1296_p13, %p1290_p10 }
  0x3e   :  { %1043 = vmatpush3.bf16.msra.mxu1 %v1150_v7  ;;  %1022 = vmatprep.subr.bf16.mxu0 %v1151_v8  ;;  %v1166_v23 = vld [vmem:[#allocation5 + $0xa8] sm:$0xff]   ;;  %v1167_v24 = vld [vmem:[#allocation5 + $0x70] sm:$0xff]   ;;  %v1171_v28 = vld [vmem:[#allocation5 + $0x78] sm:$0xff]  }
  0x3f   :  { %1044 = vmatprep.subr.bf16.mxu1 %v1152_v9  ;;  %v1168_v25 = vld [vmem:[#allocation5 + $0xf0] sm:$0xff]   ;;  %v1172_v29 = vld [vmem:[#allocation5 + $0xf8] sm:$0xff]   ;;  %v61_v32 = vld [vmem:[#allocation2] sm:$0xff] }
  0x40   :  { %v1169_v26 = vld [vmem:[#allocation5 + $0x30] sm:$0xff]   ;;  %v1173_v30 = vld [vmem:[#allocation5 + $0x38] sm:$0xff]   ;;  %v62_v33 = vld [vmem:[#allocation2 + $0x8] sm:$0xff]  ;;  %v933_v34 = vcombine.low %v61_v32, %v61_v32  ;;  %v934_v35 = vcombine.high %v61_v32, %v61_v32 }
  0x41   :  { %1023 = vmatpush3.bf16.msra.mxu0 %v1153_v10  ;;  %v1170_v27 = vld [vmem:[#allocation5 + $0xb0] sm:$0xff]   ;;  %v1174_v31 = vld [vmem:[#allocation5 + $0xb8] sm:$0xff]   ;;  %v935_v36 = vcombine.low %v62_v33, %v62_v33  ;;  %v936_v37 = vcombine.high %v62_v33, %v62_v33  ;;  %v1179_v38 = vld [vmem:[#allocation5 + $0x140] sm:$0xff]  }
  0x42   :  { %1045 = vmatpush3.bf16.msra.mxu1 %v1154_v11  ;;  %1024 = vmatprep.subr.bf16.mxu0 %v1155_v12  ;;  %v1180_v39 = vld [vmem:[#allocation5 + $0x1c0] sm:$0xff]   ;;  %v1183_v42 = vld [vmem:[#allocation5 + $0x148] sm:$0xff]   ;;  %v1187_v46 = vld [vmem:[#allocation5 + $0x150] sm:$0xff]  }
  0x43   :  { %1046 = vmatprep.subr.bf16.mxu1 %v1156_v13  ;;  %644 = vmatprep.mubr.bf16.mxu0 %v934_v35  ;;  %v1181_v40 = vld [vmem:[#allocation5 + $0x100] sm:$0xff]   ;;  %v1184_v43 = vld [vmem:[#allocation5 + $0x1c8] sm:$0xff]   ;;  %v1188_v47 = vld [vmem:[#allocation5 + $0x1d0] sm:$0xff]   ;;  %v1322_v13 = vmov 0.0  }
  0x44   :  { %684 = vmatprep.mubr.bf16.mxu1 %v936_v37  ;;  %v1182_v41 = vld [vmem:[#allocation5 + $0x180] sm:$0xff]   ;;  %v1185_v44 = vld [vmem:[#allocation5 + $0x108] sm:$0xff]   ;;  %v1189_v48 = vld [vmem:[#allocation5 + $0x110] sm:$0xff]  }
  0x45   :  { %1025 = vmatpush3.bf16.msra.mxu0 %v1157_v14  ;;  %v1186_v45 = vld [vmem:[#allocation5 + $0x188] sm:$0xff]   ;;  %v1190_v49 = vld [vmem:[#allocation5 + $0x190] sm:$0xff]   ;;  %v1191_v50 = vld [vmem:[#allocation5 + $0x158] sm:$0xff]  }
  0x46   :  { %1047 = vmatpush3.bf16.msra.mxu1 %v1158_v15  ;;  %1026 = vmatprep.subr.bf16.mxu0 %v1159_v16  ;;  %v1192_v51 = vld [vmem:[#allocation5 + $0x1d8] sm:$0xff]   ;;  %v1195_v54 = vld [vmem:[#allocation5 + $0x160] sm:$0xff]   ;;  %v1199_v58 = vld [vmem:[#allocation5 + $0x168] sm:$0xff]  }
  0x47   :  { %1048 = vmatprep.subr.bf16.mxu1 %v1160_v17  ;;  %v1193_v52 = vld [vmem:[#allocation5 + $0x118] sm:$0xff]   ;;  %v1196_v55 = vld [vmem:[#allocation5 + $0x1e0] sm:$0xff]   ;;  %v1200_v59 = vld [vmem:[#allocation5 + $0x1e8] sm:$0xff]  }
  0x48   :  { %v1194_v53 = vld [vmem:[#allocation5 + $0x198] sm:$0xff]   ;;  %v1197_v56 = vld [vmem:[#allocation5 + $0x120] sm:$0xff]   ;;  %v1201_v60 = vld [vmem:[#allocation5 + $0x128] sm:$0xff]  }
  0x49   :  { %1027 = vmatpush3.bf16.msra.mxu0 %v1161_v18  ;;  %v1198_v57 = vld [vmem:[#allocation5 + $0x1a0] sm:$0xff]   ;;  %v1202_v61 = vld [vmem:[#allocation5 + $0x1a8] sm:$0xff]   ;;  %v1203_v62 = vld [vmem:[#allocation5 + $0x170] sm:$0xff]  }
  0x4a   :  { %1049 = vmatpush3.bf16.msra.mxu1 %v1162_v19  ;;  %1028 = vmatprep.subr.bf16.mxu0 %v1163_v20  ;;  %v1204_v63 = vld [vmem:[#allocation5 + $0x1f0] sm:$0xff]   ;;  %v1207_v2 = vld [vmem:[#allocation5 + $0x178] sm:$0xff]   ;;  %v1215_v12 = vld [vmem:[#allocation7] sm:$0xff]  }
  0x4b   :  { %1050 = vmatprep.subr.bf16.mxu1 %v1164_v21  ;;  %v1205_v0 = vld [vmem:[#allocation5 + $0x130] sm:$0xff]   ;;  %v1208_v3 = vld [vmem:[#allocation5 + $0x1f8] sm:$0xff]   ;;  %v1216_v14 = vld [vmem:[#allocation7 + $0x8] sm:$0xff]  }
  0x4c   :  { %v1206_v1 = vld [vmem:[#allocation5 + $0x1b0] sm:$0xff]   ;;  %v1209_v4 = vld [vmem:[#allocation5 + $0x138] sm:$0xff]   ;;  %v1219_v17 = vld [vmem:[#allocation7 + $0x20] sm:$0xff]  }
  0x4d   :  { %1029 = vmatpush3.bf16.msra.mxu0 %v1165_v22  ;;  %v1210_v5 = vld [vmem:[#allocation5 + $0x1b8] sm:$0xff]   ;;  %v63_v6 = vld [vmem:[#allocation2 + $0x10] sm:$0xff]  ;;  %v1220_v18 = vld [vmem:[#allocation7 + $0x28] sm:$0xff]  }
  0x4e   :  { %1051 = vmatpush3.bf16.msra.mxu1 %v1166_v23  ;;  %1030 = vmatprep.subr.bf16.mxu0 %v1167_v24  ;;  %v937_v7 = vcombine.low %v63_v6, %v63_v6  ;;  %v938_v8 = vcombine.high %v63_v6, %v63_v6  ;;  %v64_v9 = vld [vmem:[#allocation2 + $0x18] sm:$0xff]  ;;  %v1217_v15 = vld [vmem:[#allocation7 + $0x10] sm:$0xff]   ;;  %v932_v23 = vld [vmem:[%s1430_s2] ss:$0 sm:$0xff] }
  0x4f   :  { %1052 = vmatprep.subr.bf16.mxu1 %v1168_v25  ;;  %v939_v10 = vcombine.low %v64_v9, %v64_v9  ;;  %v940_v11 = vcombine.high %v64_v9, %v64_v9  ;;  %v1218_v16 = vld [vmem:[#allocation7 + $0x18] sm:$0xff]   ;;  %v1221_v19 = vld [vmem:[#allocation7 + $0x30] sm:$0xff]  }
  0x50   :  { %v1222_v20 = vld [vmem:[#allocation7 + $0x38] sm:$0xff]  }
  0x51   :  { %1031 = vmatpush3.bf16.msra.mxu0 %v1169_v26 }
  0x52   :  { %1053 = vmatpush3.bf16.msra.mxu1 %v1170_v27  ;;  %1032 = vmatprep.subr.bf16.mxu0 %v1171_v28 }
  0x53   :  { %1054 = vmatprep.subr.bf16.mxu1 %v1172_v29 }
  0x55   :  { %1033 = vmatpush3.bf16.msra.mxu0 %v1173_v30 }
  0x56   :  { %1055 = vmatpush3.bf16.msra.mxu1 %v1174_v31  ;;  %1062 = vmatprep.subr.bf16.mxu0 %v1179_v38 }
  0x57   :  { %1084 = vmatprep.subr.bf16.mxu1 %v1180_v39 }
  0x58   :  { %645 = vmatmul.mubr.bf16.vlgmr.msra.gmra.mrb[0].mxu0 %v933_v34 }
  0x59   :  { %685 = vmatmul.mubr.bf16.vlgmr.msra.gmra.mrb[0].mxu1 %v935_v36  ;;  %1063 = vmatpush3.bf16.msra.mxu0 %v1181_v40 }
  0x5a   :  { %1085 = vmatpush3.bf16.msra.mxu1 %v1182_v41  ;;  %1064 = vmatprep.subr.bf16.mxu0 %v1183_v42 }
  0x5b   :  { %1086 = vmatprep.subr.bf16.mxu1 %v1184_v43  ;;  %724 = vmatprep.mubr.bf16.mxu0 %v938_v8 }
  0x5c   :  { %764 = vmatprep.mubr.bf16.mxu1 %v940_v11 }
  0x5d   :  { %1065 = vmatpush3.bf16.msra.mxu0 %v1185_v44 }
  0x5e   :  { %1087 = vmatpush3.bf16.msra.mxu1 %v1186_v45  ;;  %1066 = vmatprep.subr.bf16.mxu0 %v1187_v46 }
  0x5f   :  { %1088 = vmatprep.subr.bf16.mxu1 %v1188_v47 }
  0x61   :  { %1067 = vmatpush3.bf16.msra.mxu0 %v1189_v48 }
  0x62   :  { %1089 = vmatpush3.bf16.msra.mxu1 %v1190_v49  ;;  %1068 = vmatprep.subr.bf16.mxu0 %v1191_v50 }
  0x63   :  { %1090 = vmatprep.subr.bf16.mxu1 %v1192_v51 }
  0x65   :  { %1069 = vmatpush3.bf16.msra.mxu0 %v1193_v52 }
  0x66   :  { %1091 = vmatpush3.bf16.msra.mxu1 %v1194_v53  ;;  %1070 = vmatprep.subr.bf16.mxu0 %v1195_v54 }
  0x67   :  { %1092 = vmatprep.subr.bf16.mxu1 %v1196_v55 }
  0x69   :  { %1071 = vmatpush3.bf16.msra.mxu0 %v1197_v56 }
  0x6a   :  { %1093 = vmatpush3.bf16.msra.mxu1 %v1198_v57  ;;  %1072 = vmatprep.subr.bf16.mxu0 %v1199_v58 }
  0x6b   :  { %1094 = vmatprep.subr.bf16.mxu1 %v1200_v59 }
  0x6d   :  { %1073 = vmatpush3.bf16.msra.mxu0 %v1201_v60 }
  0x6e   :  { %1095 = vmatpush3.bf16.msra.mxu1 %v1202_v61  ;;  %1074 = vmatprep.subr.bf16.mxu0 %v1203_v62 }
  0x6f   :  { %1096 = vmatprep.subr.bf16.mxu1 %v1204_v63 }
  0x71   :  { %1075 = vmatpush3.bf16.msra.mxu0 %v1205_v0 }
  0x72   :  { %1097 = vmatpush3.bf16.msra.mxu1 %v1206_v1  ;;  %1076 = vmatprep.subr.bf16.mxu0 %v1207_v2 }
  0x73   :  { %1098 = vmatprep.subr.bf16.mxu1 %v1208_v3 }
  0x75   :  { %1077 = vmatpush3.bf16.msra.mxu0 %v1209_v4 }
  0x76   :  { %1099 = vmatpush3.bf16.msra.mxu1 %v1210_v5  ;;  %1115 = vmatprep.subr.bf16.mxu0 %v1322_v13  ;;  %v1017_v5 = vld [vmem:[%s1432_s4] ss:$0 sm:$0xff] }
  0x78   :  { %725 = vmatmul.mubr.bf16.vlgmr.msra.gmra.mrb[4].mxu0 %v937_v7 }
  0x79   :  { %765 = vmatmul.mubr.bf16.vlgmr.msra.gmra.mrb[4].mxu1 %v939_v10  ;;  %1116 = vmatpush3.bf16.msra.mxu0 %v1215_v12 }
  0x7a   :  { %1117 = vmatprep.subr.bf16.mxu0 %v1322_v13  ;;  %1131 = vmatprep.mubr.msk.bf16.mxu0 %vm1323_vm0, %v1322_v13 }
  0x7d   :  { %1118 = vmatpush3.bf16.msra.mxu0 %v1216_v14 }
  0x7e   :  { %1119 = vmatprep.subr.bf16.mxu0 %v1322_v13 }
  0x81   :  { %1120 = vmatpush3.bf16.msra.mxu0 %v1217_v15 }
  0x82   :  { %1121 = vmatprep.subr.bf16.mxu0 %v1322_v13 }
  0x85   :  { %1122 = vmatpush3.bf16.msra.mxu0 %v1218_v16 }
  0x86   :  { %1123 = vmatprep.subr.bf16.mxu0 %v1322_v13 }
  0x89   :  { %1124 = vmatpush3.bf16.msra.mxu0 %v1219_v17 }
  0x8a   :  { %1125 = vmatprep.subr.bf16.mxu0 %v1322_v13 }
  0x8d   :  { %1126 = vmatpush3.bf16.msra.mxu0 %v1220_v18 }
  0x8e   :  { %1127 = vmatprep.subr.bf16.mxu0 %v1322_v13 }
  0x91   :  { %1128 = vmatpush3.bf16.msra.mxu0 %v1221_v19 }
  0x92   :  { %1129 = vmatprep.subr.bf16.mxu0 %v1322_v13 }
  0x95   :  { %1130 = vmatpush3.bf16.msra.mxu0 %v1222_v20 }
 0x12b   :  { %v1034_v21 = vpop.f32.mrb[0].mxu0 }
 0x12c   :  { %v1056_v22 = vpop.f32.mrb[0].mxu1  ;;  %v1035_v24 = vpop.f32.mrb[1].mxu0 }
 0x12d   :  { %v1057_v25 = vpop.f32.mrb[1].mxu1  ;;  %v1036_v26 = vadd.f32 %v1035_v24, %v1034_v21  ;;  %v1037_v28 = vpop.f32.mrb[2].mxu0 }
 0x12e   :  { %v1058_v27 = vadd.f32 %v1057_v25, %v1056_v22  ;;  %v1059_v29 = vpop.f32.mrb[2].mxu1  ;;  %v1038_v30 = vpop.f32.mrb[3].mxu0 }
 0x12f   :  { %v1060_v31 = vpop.f32.mrb[3].mxu1  ;;  %v647_v32 = vadd.f32 %v1036_v26, %v932_v23 }
 0x131   :  { %v687_v33 = vadd.f32 %v1058_v27, %v647_v32 }
 0x14b   :  { %v1078_v34 = vpop.f32.mrb[4].mxu0 }
 0x14c   :  { %v1100_v35 = vpop.f32.mrb[4].mxu1  ;;  %v1079_v36 = vpop.f32.mrb[5].mxu0 }
 0x14d   :  { %v1101_v37 = vpop.f32.mrb[5].mxu1  ;;  %v1080_v38 = vadd.f32 %v1079_v36, %v1078_v34  ;;  %v1081_v40 = vpop.f32.mrb[6].mxu0 }
 0x14e   :  { %v1102_v39 = vadd.f32 %v1101_v37, %v1100_v35  ;;  %v1103_v41 = vpop.f32.mrb[6].mxu1  ;;  %v1082_v42 = vpop.f32.mrb[7].mxu0 }
 0x14f   :  { %v1104_v43 = vpop.f32.mrb[7].mxu1  ;;  %v727_v44 = vadd.f32 %v1080_v38, %v687_v33 }
 0x151   :  { %v767_v45 = vadd.f32 %v1102_v39, %v727_v44 }
 0x153   :  { %v772_v46 = vadd.f32 0.5, %v767_v45  ;;  %v792_v56 = vmul.f32 4.0, %v767_v45 }
 0x155   :  { %vm773_vm1 = vcmp.ge.f32.partialorder %v772_v46, 1.0  ;;  %v793_v59 = vadd.f32 0.5, %v792_v56 }
 0x156   :  { %v1005_v47 = vsel %vm773_vm1, 1.0, %v1322_v13 }
 0x157   :  { %v776_v48 = vsub.f32 %v772_v46, %v1005_v47 }
 0x159   :  { %v777_v49 = vadd.f32 %v776_v48, %v767_v45 }
 0x15b   :  { %vm778_vm2 = vcmp.ge.f32.partialorder %v777_v49, 1.0 }
 0x15c   :  { %v1006_v50 = vsel %vm778_vm2, 1.0, %v1322_v13 }
 0x15d   :  { %v781_v51 = vsub.f32 %v777_v49, %v1006_v50 }
 0x15f   :  { %v782_v52 = vadd.f32 %v781_v51, %v767_v45 }
 0x161   :  { %vm783_vm3 = vcmp.ge.f32.partialorder %v782_v52, 1.0 }
 0x162   :  { %v1007_v53 = vsel %vm783_vm3, 1.0, %v1322_v13 }
 0x163   :  { %v786_v54 = vsub.f32 %v782_v52, %v1007_v53 }
 0x165   :  { %v787_v55 = vadd.f32 %v786_v54, %v767_v45 }
 0x167   :  { %vm788_vm4 = vcmp.ge.f32.partialorder %v787_v55, 1.0 }
 0x168   :  { %v1008_v57 = vsel %vm788_vm4, 1.0, %v1322_v13 }
 0x169   :  { %v791_v58 = vsub.f32 %v787_v55, %v1008_v57 }
 0x16b   :  { %v794_v60 = vsub.f32 %v793_v59, %v791_v58  ;;  %v797_v61 = vmax.f32 %v791_v58, 0.0 }
 0x16d   :  { %v795_v62 = vadd.f32 0.5, %v794_v60  ;;  %v798_v63 = vfloor.f32 %v797_v61 }
 0x16f   :  { %v796_v0 = vfloor.f32 %v795_v62  ;;  %v799_v1 = vmin.f32 %v798_v63, 4.0 }
 0x171   :  { %v800_v2 = vadd.f32 %v799_v1, %v796_v0 }
 0x173   :  { %v801_v3 = vpack.c.bf16 %v800_v2, %v800_v2 }
 0x175   :  { %1132 = vmatmul.mubr.bf16.vlgmr.msra.gmra.mrb[8].mxu0 %v801_v3 }
 0x248   :  { %v900_v4 = vpop.f32.mrb[8].mxu0 }
 0x249   :  { %v906_v6 = vmul.f32 0.25, %v900_v4  ;;  %v1133_v7 = vpop.f32.mrb[9].mxu0 }
 0x24a   :  { %v903_v8 = vpop.f32.mrb[10].mxu0 }
 0x24b   :  { %v914_v9 = vadd.f32 %v1017_v5, %v906_v6  ;;  %v1134_v10 = vpop.f32.mrb[11].mxu0 }
 0x24d   :  { %915 = vst [vmem:[#allocation8] sm:$0xff] %v914_v9 }
 0x24e   :  { %1300 = shalt.err (!%p1297_p0)
}
 0x24f   :  { %s1301_s4 = scalar_lea.hbm %s1433_s5, 128 }
 0x250   :  { %p1302_p1 = scmp.ne.s32.totalorder %s1433_s5, %s1301_s4  ;;  %p1305_p2 = scmp.lt.u32.totalorder %s1301_s4, %s1433_s5 }
 0x252   :  { %p1307_p3 = pnand %p1305_p2, %p1302_p1 }
 0x254   :  { %1310 = shalt.err (!%p1307_p3)
}
 0x255   :  { %925 = dma.vmem_to_hbm [thread:$0]  %s923_s7, 128, %s1433_s5, [#allocation4]  }
 0x256   :  { %1315 = dma.done.wait [#allocation4], 128  }
 0x257   :  { %1316 = vsyncadd [#allocation4], 4294967168 }
 0x258   :  { %929 = vsyncpa [#allocation3], 1 }
 0x259   :  { %930 = vsyncpa [#allocation6], 1 }
 0x25a   :  { %931 = vsyncpa [#allocation4], 1 }

</bundles_post_ra>
